<compile_context>
chip_gen: v5e
topology: v5e:2x2
jax: 0.10.0
libtpu: 0.0.40
codegen_flags: <defaults>
</compile_context>

<pallas_src>
import functools

import jax
import jax.numpy as jnp
from jax.experimental import pallas as pl
from jax.experimental.pallas import tpu as pltpu


_MAX_BLOCK_N = 8192        # lane-axis batch tile cap (multiple of 128)
_SPLIT_THRESHOLD = 4096    # only split the grid (for v7x's 2 TCs) above this


def _round_up(x: int, m: int) -> int:
    return ((x + m - 1) // m) * m


def _cdiv(a: int, b: int) -> int:
    return -(-a // b)


def _default_elementwise_dtype():
    """bf16 bias/ReLU on chips with a bf16 VPU (v6e/v7x), f32 otherwise."""
    try:
        kind = jax.devices()[0].device_kind.lower()
    except Exception:
        return jnp.float32
    if ("v3" in kind) or ("v4" in kind) or ("v5" in kind):
        return jnp.float32
    return jnp.bfloat16


def _mlp_kernel(x_ref, w1_ref, b1_ref, w2_ref, b2_ref, w3_ref, b3_ref, o_ref):
    """Fused 3-layer MLP on one batch tile; batch ends up on the lane axis.

    x_ref:  (block_n, d_in)   f32, natural layout (cast + reorient in-kernel)
    w*_ref: (out_f, in_f)     bf16 (compute dtype)  -- torch Linear layout
    b1/b2:  (d_hid, 1)        elementwise dtype (f32 on v5e-, bf16 on v6e+)
    b3:     (d_out, 1)        f32
    o_ref:  (d_out, block_n)  f32, lane-dense
    """
    x = x_ref[...].astype(w1_ref.dtype)                       # bf16 cast (VPU)

    # layer 1: contract the feature dim of x against w1's in_features.
    # 'hk,nk->hn' is the rhs-transposed MXU form -> (d_hid, block_n), batch on
    # the lane axis, f32 accumulation.
    h1 = jnp.einsum("hk,nk->hn", w1_ref[...], x,
                    preferred_element_type=jnp.float32)
    h1 = jnp.maximum(h1.astype(b1_ref.dtype) + b1_ref[...], 0)

    # layer 2
    h2 = jnp.dot(w2_ref[...], h1.astype(w2_ref.dtype),
                 preferred_element_type=jnp.float32)
    h2 = jnp.maximum(h2.astype(b2_ref.dtype) + b2_ref[...], 0)

    # layer 3 (no activation), f32 bias + f32 output
    y = jnp.dot(w3_ref[...], h2.astype(w3_ref.dtype),
                preferred_element_type=jnp.float32) + b3_ref[...]
    o_ref[...] = y.astype(o_ref.dtype)


@functools.partial(jax.jit, static_argnames=("compute_dtype", "ew_dtype"))
def _discriminator_forward_impl(x, params, compute_dtype, ew_dtype):
    w1, b1 = params["w1"], params["b1"]
    w2, b2 = params["w2"], params["b2"]
    w3, b3 = params["w3"], params["b3"]

    n, d_in = x.shape
    d_hid = w1.shape[0]
    d_out = w3.shape[0]

    # ---- batch tiling: big lane-dense tiles, split only when it pays off ----
    padded_min = _round_up(n, 128)
    steps = max(_cdiv(padded_min, _MAX_BLOCK_N),
                2 if padded_min >= _SPLIT_THRESHOLD else 1)
    block_n = _round_up(_cdiv(padded_min, steps), 128)
    padded_n = steps * block_n
    grid = (steps,)

    # Only a cheap batch pad stays wrapper-side; cast + reorientation of x
    # happen inside the kernel.
    xp = jnp.pad(x, ((0, padded_n - n), (0, 0)))

    w1c = w1.astype(compute_dtype)
    w2c = w2.astype(compute_dtype)
    w3c = w3.astype(compute_dtype)
    b1c = b1.astype(ew_dtype)
    b2c = b2.astype(ew_dtype)
    b3f = b3.astype(jnp.float32)

    flops = 2 * padded_n * (d_in * d_hid + d_hid * d_hid + d_hid * d_out)
    bytes_accessed = (
        padded_n * d_in * xp.dtype.itemsize              # x read
        + padded_n * d_out * 4                            # output write (f32)
        + (w1c.size + w2c.size + w3c.size) * jnp.dtype(compute_dtype).itemsize
        + (b1c.size + b2c.size) * jnp.dtype(ew_dtype).itemsize
        + b3f.size * 4)
    cost = pl.CostEstimate(flops=flops, transcendentals=0,
                           bytes_accessed=int(bytes_accessed))

    out_t = pl.pallas_call(
        _mlp_kernel,
        out_shape=jax.ShapeDtypeStruct((d_out, padded_n), jnp.float32),
        grid=grid,
        in_specs=[
            # activations: natural layout, tiled over the batch dimension
            pl.BlockSpec((block_n, d_in), lambda i: (i, 0)),
            # weights / biases: full arrays, same block every step (resident)
            pl.BlockSpec((d_hid, d_in), lambda i: (0, 0)),
            pl.BlockSpec((d_hid, 1), lambda i: (0, 0)),
            pl.BlockSpec((d_hid, d_hid), lambda i: (0, 0)),
            pl.BlockSpec((d_hid, 1), lambda i: (0, 0)),
            pl.BlockSpec((d_out, d_hid), lambda i: (0, 0)),
            pl.BlockSpec((d_out, 1), lambda i: (0, 0)),
        ],
        out_specs=pl.BlockSpec((d_out, block_n), lambda i: (0, i)),
        compiler_params=pltpu.CompilerParams(
            dimension_semantics=("parallel",)),
        cost_estimate=cost,
    )(xp, w1c, b1c, w2c, b2c, w3c, b3f)

    # drop the batch padding and return in the original (N, d_out) layout
    return out_t[:, :n].T.astype(x.dtype)


def discriminator_forward(x, params, compute_dtype=jnp.bfloat16, ew_dtype=None):
    """x: (N, in_channels) float32. params: w* as (out, in), b* as (out, 1)."""
    if ew_dtype is None:
        ew_dtype = _default_elementwise_dtype()
    return _discriminator_forward_impl(x, params, compute_dtype, ew_dtype)


def init_params(key, in_channels, hidden_channels, out_channels):
    """Deterministic init mirroring torch.nn.Linear's U(-1/sqrt(fan_in), +)."""

    def linear_init(k, fan_in, fan_out):
        kw, kb = jax.random.split(k)
        bound = 1.0 / jnp.sqrt(fan_in)
        # torch layout: W is (out_features, in_features), bias kept as (out, 1)
        w = jax.random.uniform(kw, (fan_out, fan_in), jnp.float32, -bound, bound)
        b = jax.random.uniform(kb, (fan_out, 1), jnp.float32, -bound, bound)
        return w, b

    k1, k2, k3 = jax.random.split(key, 3)
    w1, b1 = linear_init(k1, in_channels, hidden_channels)
    w2, b2 = linear_init(k2, hidden_channels, hidden_channels)
    w3, b3 = linear_init(k3, hidden_channels, out_channels)
    return {"w1": w1, "b1": b1, "w2": w2, "b2": b2, "w3": w3, "b3": b3}


def _reference_forward(x, p):
    h1 = jnp.maximum(x @ p["w1"].T + p["b1"][:, 0], 0.0)
    h2 = jnp.maximum(h1 @ p["w2"].T + p["b2"][:, 0], 0.0)
    return h2 @ p["w3"].T + p["b3"][:, 0]


if __name__ == "__main__":
    # Shapes consistent with the module: in=16, hidden=32, out=8.
    in_channels, hidden_channels, out_channels = 16, 32, 8

    key = jax.random.PRNGKey(0)
    kx, kp = jax.random.split(key)
    params = init_params(kp, in_channels, hidden_channels, out_channels)

    # batch=8: single padded tile; batch=300: non-128-multiple, single tile;
    # batch=4500: exercises the 2-step parallel grid (resident-weight path).
    for batch in (8, 300, 4500):
        x = jax.random.normal(jax.random.fold_in(kx, batch),
                              (batch, in_channels), dtype=jnp.float32)

        out = jax.block_until_ready(discriminator_forward(x, params))
        ref = _reference_forward(x, params)

        assert out.shape == (batch, out_channels)
        assert bool(jnp.all(jnp.isfinite(out))), "non-finite output"
        # bf16 MXU operands (f32 accumulation) vs. f32 reference -> loosened tol
        assert jnp.allclose(out, ref, atol=5e-2, rtol=5e-2), "mismatch vs reference"

    print("KERNEL_OK")
</pallas_src>

<mosaic_0001>
module attributes {stable_mosaic.version = 11 : i64} {
  func.func @_mlp_kernel(%arg0: i32, %arg1: memref<128x16xf32, #tpu.memory_space<vmem>>, %arg2: memref<32x16xbf16, #tpu.memory_space<vmem>>, %arg3: memref<32x1xbf16, #tpu.memory_space<vmem>>, %arg4: memref<32x32xbf16, #tpu.memory_space<vmem>>, %arg5: memref<32x1xbf16, #tpu.memory_space<vmem>>, %arg6: memref<8x32xbf16, #tpu.memory_space<vmem>>, %arg7: memref<8x1xf32, #tpu.memory_space<vmem>>, %arg8: memref<8x128xf32, #tpu.memory_space<vmem>>) attributes {dimension_semantics = [#tpu.dimension_semantics<parallel>], iteration_bounds = array<i64: 1>, scalar_prefetch = 0 : i64, scratch_operands = 0 : i64, tpu.core_type = #tpu.core_type<tc>, window_params = [{transform_indices = @transform_0, window_bounds = array<i64: 128, 16>}, {pipeline_mode = #tpu.pipeline_mode<synchronous>, transform_indices = @transform_1, window_bounds = array<i64: 32, 16>}, {pipeline_mode = #tpu.pipeline_mode<synchronous>, transform_indices = @transform_2, window_bounds = array<i64: 32, 1>}, {pipeline_mode = #tpu.pipeline_mode<synchronous>, transform_indices = @transform_3, window_bounds = array<i64: 32, 32>}, {pipeline_mode = #tpu.pipeline_mode<synchronous>, transform_indices = @transform_4, window_bounds = array<i64: 32, 1>}, {pipeline_mode = #tpu.pipeline_mode<synchronous>, transform_indices = @transform_5, window_bounds = array<i64: 8, 32>}, {pipeline_mode = #tpu.pipeline_mode<synchronous>, transform_indices = @transform_6, window_bounds = array<i64: 8, 1>}, {transform_indices = @transform_7, window_bounds = array<i64: 8, 128>}]} {
    %c0 = arith.constant 0 : index
    %c0_0 = arith.constant 0 : index
    %0 = vector.load %arg1[%c0, %c0_0] : memref<128x16xf32, #tpu.memory_space<vmem>>, vector<128x16xf32>
    %1 = arith.truncf %0 : vector<128x16xf32> to vector<128x16xbf16>
    %c0_1 = arith.constant 0 : index
    %c0_2 = arith.constant 0 : index
    %2 = vector.load %arg2[%c0_1, %c0_2] : memref<32x16xbf16, #tpu.memory_space<vmem>>, vector<32x16xbf16>
    "tpu.trace_start"() <{level = 10 : i32, message = "hk,nk->hn"}> : () -> ()
    %cst = arith.constant dense<0.000000e+00> : vector<32x128xf32>
    %3 = tpu.matmul %2, %1, %cst {dimension_numbers = #tpu.dot_dimension_numbers<[1], [1], [0], [0], [0, 0, 1, 0], [], []>} : vector<32x16xbf16>, vector<128x16xbf16>, vector<32x128xf32> -> vector<32x128xf32>
    "tpu.trace_stop"() : () -> ()
    %4 = arith.truncf %3 : vector<32x128xf32> to vector<32x128xbf16>
    %c0_3 = arith.constant 0 : index
    %c0_4 = arith.constant 0 : index
    %5 = vector.load %arg3[%c0_3, %c0_4] : memref<32x1xbf16, #tpu.memory_space<vmem>>, vector<32x1xbf16>
    %6 = vector.broadcast %5 : vector<32x1xbf16> to vector<32x128xbf16>
    %7 = arith.addf %4, %6 : vector<32x128xbf16>
    %cst_5 = arith.constant 0.000000e+00 : bf16
    %8 = vector.broadcast %cst_5 : bf16 to vector<32x128xbf16>
    %9 = arith.maximumf %7, %8 : vector<32x128xbf16>
    %c0_6 = arith.constant 0 : index
    %c0_7 = arith.constant 0 : index
    %10 = vector.load %arg4[%c0_6, %c0_7] : memref<32x32xbf16, #tpu.memory_space<vmem>>, vector<32x32xbf16>
    %cst_8 = arith.constant dense<0.000000e+00> : vector<32x128xf32>
    %11 = tpu.matmul %10, %9, %cst_8 {dimension_numbers = #tpu.dot_dimension_numbers<[1], [0], [0], [1], [0, 0, 1, 1], [], []>} : vector<32x32xbf16>, vector<32x128xbf16>, vector<32x128xf32> -> vector<32x128xf32>
    %12 = arith.truncf %11 : vector<32x128xf32> to vector<32x128xbf16>
    %c0_9 = arith.constant 0 : index
    %c0_10 = arith.constant 0 : index
    %13 = vector.load %arg5[%c0_9, %c0_10] : memref<32x1xbf16, #tpu.memory_space<vmem>>, vector<32x1xbf16>
    %14 = vector.broadcast %13 : vector<32x1xbf16> to vector<32x128xbf16>
    %15 = arith.addf %12, %14 : vector<32x128xbf16>
    %cst_11 = arith.constant 0.000000e+00 : bf16
    %16 = vector.broadcast %cst_11 : bf16 to vector<32x128xbf16>
    %17 = arith.maximumf %15, %16 : vector<32x128xbf16>
    %c0_12 = arith.constant 0 : index
    %c0_13 = arith.constant 0 : index
    %18 = vector.load %arg6[%c0_12, %c0_13] : memref<8x32xbf16, #tpu.memory_space<vmem>>, vector<8x32xbf16>
    %cst_14 = arith.constant dense<0.000000e+00> : vector<8x128xf32>
    %19 = tpu.matmul %18, %17, %cst_14 {dimension_numbers = #tpu.dot_dimension_numbers<[1], [0], [0], [1], [0, 0, 1, 1], [], []>} : vector<8x32xbf16>, vector<32x128xbf16>, vector<8x128xf32> -> vector<8x128xf32>
    %c0_15 = arith.constant 0 : index
    %c0_16 = arith.constant 0 : index
    %20 = vector.load %arg7[%c0_15, %c0_16] : memref<8x1xf32, #tpu.memory_space<vmem>>, vector<8x1xf32>
    %21 = vector.broadcast %20 : vector<8x1xf32> to vector<8x128xf32>
    %22 = arith.addf %19, %21 : vector<8x128xf32>
    %c0_17 = arith.constant 0 : index
    %c0_18 = arith.constant 0 : index
    %23 = vector.load %arg8[%c0_17, %c0_18] : memref<8x128xf32, #tpu.memory_space<vmem>>, vector<8x128xf32>
    tpu.vector_store %arg8[%c0_17, %c0_18], %22 {strides = array<i32>} : memref<8x128xf32, #tpu.memory_space<vmem>>, vector<8x128xf32>,
    return
  }
  func.func @transform_0(%arg0: i32) -> (i32, i32) {
    %c0_i32 = arith.constant 0 : i32
    %c0_i32_0 = arith.constant 0 : i32
    return %arg0, %c0_i32 : i32, i32
  }
  func.func @transform_1(%arg0: i32) -> (i32, i32) {
    %c0_i32 = arith.constant 0 : i32
    %c0_i32_0 = arith.constant 0 : i32
    %c0_i32_1 = arith.constant 0 : i32
    return %c0_i32, %c0_i32_0 : i32, i32
  }
  func.func @transform_2(%arg0: i32) -> (i32, i32) {
    %c0_i32 = arith.constant 0 : i32
    %c0_i32_0 = arith.constant 0 : i32
    %c0_i32_1 = arith.constant 0 : i32
    return %c0_i32, %c0_i32_0 : i32, i32
  }
  func.func @transform_3(%arg0: i32) -> (i32, i32) {
    %c0_i32 = arith.constant 0 : i32
    %c0_i32_0 = arith.constant 0 : i32
    %c0_i32_1 = arith.constant 0 : i32
    return %c0_i32, %c0_i32_0 : i32, i32
  }
  func.func @transform_4(%arg0: i32) -> (i32, i32) {
    %c0_i32 = arith.constant 0 : i32
    %c0_i32_0 = arith.constant 0 : i32
    %c0_i32_1 = arith.constant 0 : i32
    return %c0_i32, %c0_i32_0 : i32, i32
  }
  func.func @transform_5(%arg0: i32) -> (i32, i32) {
    %c0_i32 = arith.constant 0 : i32
    %c0_i32_0 = arith.constant 0 : i32
    %c0_i32_1 = arith.constant 0 : i32
    return %c0_i32, %c0_i32_0 : i32, i32
  }
  func.func @transform_6(%arg0: i32) -> (i32, i32) {
    %c0_i32 = arith.constant 0 : i32
    %c0_i32_0 = arith.constant 0 : i32
    %c0_i32_1 = arith.constant 0 : i32
    return %c0_i32, %c0_i32_0 : i32, i32
  }
  func.func @transform_7(%arg0: i32) -> (i32, i32) {
    %c0_i32 = arith.constant 0 : i32
    %c0_i32_0 = arith.constant 0 : i32
    return %c0_i32, %arg0 : i32, i32
  }
}

</mosaic_0001>

<bundles_post_ra>
// kernel: _discriminator_forward_impl.1
= control target key start
LH: loop header
LB: loop body
LE: loop exit
PB: predicated region body
PF: predicated region fallthrough
CT: control target
= control target key end

     0   :  { %vm65_vm0 = vcmask 130048   ;;  %v361_v19 = vmov 0   ;;  %v362_v43 = vmov 839922192   ;;  %vm199_vm1 = vcmask 261120   ;;  %s519_s0 = inlined_call_operand.vmem [shape: f32[128,16], index: 0, kind: input, shape index: {}]   ;;  %s520_s2 = inlined_call_operand.vmem [shape: bf16[32,1], index: 2, kind: input, shape index: {}]   ;;  %s521_s4 = inlined_call_operand.vmem [shape: bf16[32,1], index: 4, kind: input, shape index: {}]   ;;  %s522_s1 = inlined_call_operand.vmem [shape: bf16[32,16], index: 1, kind: input, shape index: {}]   ;;  %s523_s3 = inlined_call_operand.vmem [shape: bf16[32,32], index: 3, kind: input, shape index: {}]   ;;  %s524_s6 = inlined_call_operand.vmem [shape: f32[8,1], index: 6, kind: input, shape index: {}]   ;;  %s525_s5 = inlined_call_operand.vmem [shape: bf16[8,32], index: 5, kind: input, shape index: {}]   ;;  %s526_s7 = inlined_call_operand.vmem [shape: f32[8,128], index: 7, kind: output, shape index: {}]  }
   0x1   :  { %v41_v0 = vld [vmem:[%s519_s0 + $0x70] sm:$0xff]  ;;  %v42_v1 = vld [vmem:[%s519_s0 + $0x78] sm:$0xff]  ;;  %v39_v3 = vld [vmem:[%s519_s0 + $0x60] sm:$0xff]  ;;  %358 = vset.pattern.permute.xlu0 %v361_v19  ;;  %359 = vset.pattern.permute.xlu1 %v361_v19  ;;  %v129_v44 = vunpack.c.l.s4 %v362_v43 }
   0x2   :  { %v50_v2 = vpack.c.bf16 %v42_v1, %v41_v0  ;;  %v40_v4 = vld [vmem:[%s519_s0 + $0x68] sm:$0xff]  ;;  %v37_v8 = vld [vmem:[%s519_s0 + $0x50] sm:$0xff]  ;;  %v38_v9 = vld [vmem:[%s519_s0 + $0x58] sm:$0xff]  ;;  %360 = vset.pattern.permute.xlu2 %v361_v19 }
   0x3   :  { %v49_v6 = vpack.c.bf16 %v40_v4, %v39_v3  ;;  %v48_v10 = vpack.c.bf16 %v38_v9, %v37_v8  ;;  %v35_v12 = vld [vmem:[%s519_s0 + $0x40] sm:$0xff]  ;;  %v36_v13 = vld [vmem:[%s519_s0 + $0x48] sm:$0xff]  ;;  %v33_v16 = vld [vmem:[%s519_s0 + $0x30] sm:$0xff]  ;;  %v485_v46 = vunpack.c.0.s8 %v129_v44 }
   0x4   :  { %v94_v5 = vsel %vm65_vm0, %v50_v2, 0  ;;  %v47_v14 = vpack.c.bf16 %v36_v13, %v35_v12  ;;  %v34_v17 = vld [vmem:[%s519_s0 + $0x38] sm:$0xff]  ;;  %v31_v21 = vld [vmem:[%s519_s0 + $0x20] sm:$0xff]  ;;  %v32_v22 = vld [vmem:[%s519_s0 + $0x28] sm:$0xff] }
   0x5   :  { %348 = vmatpush.bf16.xpose.msra.mxu3 %v94_v5  ;;  %96 = vmatpush.bf16.xpose.msra.mxu0 %v94_v5  ;;  %v91_v7 = vsel %vm65_vm0, %v49_v6, 0  ;;  %v88_v11 = vsel %vm65_vm0, %v48_v10, 0  ;;  %v46_v18 = vpack.c.bf16 %v34_v17, %v33_v16  ;;  %v121_v23 = vld [vmem:[%s520_s2 + $0x8] sm:$0xf]  ;;  %v119_v24 = vld [vmem:[%s520_s2] sm:$0xf]  ;;  %v45_v25 = vpack.c.bf16 %v32_v22, %v31_v21 }
   0x6   :  { %v85_v15 = vsel %vm65_vm0, %v47_v14, 0  ;;  %143 = vperm.xlu0 %358, %v121_v23   ;;  %125 = vperm.xlu1 %359, %v119_v24   ;;  %v29_v27 = vld [vmem:[%s519_s0 + $0x10] sm:$0xff]  ;;  %v30_v28 = vld [vmem:[%s519_s0 + $0x18] sm:$0xff]  ;;  %v122_v29 = vld [vmem:[%s520_s2 + $0xc] sm:$0xf] }
   0x7   :  { %v82_v20 = vsel %vm65_vm0, %v46_v18, 0  ;;  %v79_v26 = vsel %vm65_vm0, %v45_v25, 0  ;;  %v120_v30 = vld [vmem:[%s520_s2 + $0x4] sm:$0xf]  ;;  %v44_v31 = vpack.c.bf16 %v30_v28, %v29_v27  ;;  %v28_v34 = vld [vmem:[%s519_s0 + $0x8] sm:$0xff] }
   0x8   :  { %v27_v33 = vld [vmem:[%s519_s0] sm:$0xff]  ;;  %v345_v39 = vld [vmem:[%s522_s1 + $0x8] sm:$0xff] }
   0x9   :  { %v76_v32 = vsel %vm65_vm0, %v44_v31, 0  ;;  %v229_v35 = vld [vmem:[%s521_s4] sm:$0xf]  ;;  %v230_v36 = vld [vmem:[%s521_s4 + $0x4] sm:$0xf]  ;;  %v43_v37 = vpack.c.bf16 %v28_v34, %v27_v33  ;;  %v347_v18 = vld [vmem:[%s523_s3 + $0x8] sm:$0xff] }
   0xa   :  { %v344_v40 = vld [vmem:[%s522_s1] sm:$0xff]  ;;  %v231_v2 = vld [vmem:[%s521_s4 + $0x8] sm:$0xf] }
   0xb   :  { %v73_v38 = vsel %vm65_vm0, %v43_v37, 0  ;;  %253 = vperm.xlu2 %360, %v231_v2   ;;  %v346_v16 = vld [vmem:[%s523_s3] sm:$0xff] }
   0xc   :  { %v296_v17 = vld [vmem:[%s524_s6] sm:$0xff] }
   0xd   :  { %349 = vmatpush.bf16.xpose.msra.mxu3 %v91_v7  ;;  %97 = vmatpush.bf16.xpose.msra.mxu0 %v91_v7 }
   0xe   :  { %152 = vperm.xlu0 %358, %v122_v29   ;;  %134 = vperm.xlu1 %359, %v120_v30  }
  0x15   :  { %350 = vmatpush.bf16.xpose.msra.mxu3 %v88_v11  ;;  %98 = vmatpush.bf16.xpose.msra.mxu0 %v88_v11  ;;  %v232_v11 = vld [vmem:[%s521_s4 + $0xc] sm:$0xf] }
  0x16   :  { %235 = vperm.xlu0 %358, %v229_v35   ;;  %244 = vperm.xlu1 %359, %v230_v36  }
  0x17   :  { %262 = vperm.xlu2 %360, %v232_v11  }
  0x1d   :  { %351 = vmatpush.bf16.xpose.msra.mxu3 %v85_v15  ;;  %99 = vmatpush.bf16.xpose.msra.mxu0 %v85_v15 }
  0x1f   :  { %299 = vperm.xlu2 %360, %v296_v17  }
  0x25   :  { %352 = vmatpush.bf16.xpose.msra.mxu3 %v82_v20  ;;  %100 = vmatpush.bf16.xpose.msra.mxu0 %v82_v20 }
  0x2d   :  { %353 = vmatpush.bf16.xpose.msra.mxu3 %v79_v26  ;;  %101 = vmatpush.bf16.xpose.msra.mxu0 %v79_v26 }
  0x35   :  { %354 = vmatpush.bf16.xpose.msra.mxu3 %v76_v32  ;;  %102 = vmatpush.bf16.xpose.msra.mxu0 %v76_v32 }
  0x3d   :  { %355 = vmatpush.bf16.xpose.msra.mxu3 %v73_v38  ;;  %103 = vmatpush.bf16.xpose.msra.mxu0 %v73_v38 }
  0x44   :  { %332 = vmatmul.msk.bf16.vlgmr.msra.gmra.mxu3 %vm65_vm0, %v345_v39  ;;  %331 = vmatmul.msk.bf16.vlgmr.msra.gmra.mxu0 %vm65_vm0, %v344_v40 }
  0x65   :  { %v254_v21 = vpop.permute.xlu2 %253 }
  0x66   :  { %v259_v24 = vperm.slane %v254_v21, %v485_v46 }
  0x68   :  { %v275_v30 = vunpack.c.l.bf16 %v259_v24 }
  0x71   :  { %v263_v29 = vpop.permute.xlu2 %262 }
  0x72   :  { %v268_v32 = vperm.slane %v263_v29, %v485_v46 }
  0x74   :  { %v276_v40 = vunpack.c.l.bf16 %v268_v32 }
  0x78   :  { %v126_v41 = vpop.permute.xlu1 %125  ;;  %v144_v45 = vpop.permute.xlu0 %143 }
  0x79   :  { %v149_v49 = vperm.slane %v144_v45, %v485_v46  ;;  %v131_v51 = vperm.slane %v126_v41, %v485_v46 }
  0x7b   :  { %v165_v57 = vunpack.c.l.bf16 %v149_v49  ;;  %v163_v60 = vunpack.c.l.bf16 %v131_v51 }
  0x80   :  { %v135_v52 = vpop.permute.xlu1 %134  ;;  %v153_v56 = vpop.permute.xlu0 %152 }
  0x81   :  { %v140_v53 = vperm.slane %v135_v52, %v485_v46  ;;  %v158_v58 = vperm.slane %v153_v56, %v485_v46 }
  0x83   :  { %v164_v62 = vunpack.c.l.bf16 %v140_v53  ;;  %v166_v3 = vunpack.c.l.bf16 %v158_v58 }
  0x88   :  { %v245_v23 = vpop.permute.xlu1 %244  ;;  %v236_v27 = vpop.permute.xlu0 %235 }
  0x89   :  { %v250_v28 = vperm.slane %v245_v23, %v485_v46  ;;  %v241_v35 = vperm.slane %v236_v27, %v485_v46  ;;  %v295_v46 = vld [vmem:[%s525_s5] sm:$0xf] }
  0x8b   :  { %v274_v38 = vunpack.c.l.bf16 %v250_v28  ;;  %v273_v43 = vunpack.c.l.bf16 %v241_v35 }
  0xc1   :  { %v105_v42 = vpop.f32.mrf.mxu0 }
  0xc2   :  { %v115_v54 = vpack.c.bf16 %v105_v42, %v105_v42 }
  0xc4   :  { %v159_v63 = vunpack.c.l.bf16 %v115_v54  ;;  %v300_v54 = vpop.permute.xlu2 %299 }
  0xc6   :  { %v167_v6 = vadd.f32 %v163_v60, %v159_v63 }
  0xc7   :  { %v110_v47 = vpop.f32.mrf.mxu3 }
  0xc8   :  { %v117_v50 = vpack.c.bf16 %v110_v47, %v110_v47  ;;  %v179_v14 = vmax.f32 %v167_v6, 0.0 }
  0xc9   :  { %v107_v48 = vpop.f32.mrf.mxu0 }
  0xca   :  { %v116_v55 = vpack.c.bf16 %v107_v48, %v107_v48  ;;  %v161_v59 = vunpack.c.l.bf16 %v117_v50 }
  0xcc   :  { %v160_v0 = vunpack.c.l.bf16 %v116_v55  ;;  %v169_v5 = vadd.f32 %v165_v57, %v161_v59 }
  0xce   :  { %v168_v7 = vadd.f32 %v164_v62, %v160_v0  ;;  %v181_v9 = vmax.f32 %v169_v5, 0.0 }
  0xcf   :  { %v112_v61 = vpop.f32.mrf.mxu3 }
  0xd0   :  { %v118_v1 = vpack.c.bf16 %v112_v61, %v112_v61  ;;  %v180_v12 = vmax.f32 %v168_v7, 0.0 }
  0xd2   :  { %v162_v4 = vunpack.c.l.bf16 %v118_v1  ;;  %v183_v15 = vpack.c.bf16 %v180_v12, %v179_v14 }
  0xd4   :  { %v170_v8 = vadd.f32 %v166_v3, %v162_v4 }
  0xd6   :  { %v182_v10 = vmax.f32 %v170_v8, 0.0 }
  0xd8   :  { %v184_v13 = vpack.c.bf16 %v182_v10, %v181_v9 }
  0xda   :  { %212 = vmatpush.bf16.msra.mxu1 %v184_v13 }
  0xde   :  { %213 = vmatpush.bf16.msra.mxu1 %v183_v15 }
  0xe1   :  { %341 = vmatmul.msk.bf16.vlgmr.msra.gmra.mxu1 %vm199_vm1, %v346_v16 }
  0xf1   :  { %342 = vmatmul.msk.bf16.gmra.mxu1 %vm199_vm1, %v347_v18 }
 0x15e   :  { %v215_v19 = vpop.f32.mrf.mxu1 }
 0x15f   :  { %v225_v31 = vpack.c.bf16 %v215_v19, %v215_v19 }
 0x161   :  { %v269_v39 = vunpack.c.l.bf16 %v225_v31 }
 0x163   :  { %v277_v47 = vadd.f32 %v273_v43, %v269_v39 }
 0x165   :  { %v289_v52 = vmax.f32 %v277_v47, 0.0 }
 0x166   :  { %v217_v20 = vpop.f32.mrf.mxu1 }
 0x167   :  { %v226_v26 = vpack.c.bf16 %v217_v20, %v217_v20 }
 0x169   :  { %v270_v36 = vunpack.c.l.bf16 %v226_v26 }
 0x16b   :  { %v278_v44 = vadd.f32 %v274_v38, %v270_v36 }
 0x16d   :  { %v290_v51 = vmax.f32 %v278_v44, 0.0 }
 0x16e   :  { %v220_v22 = vpop.f32.mrf.mxu1 }
 0x16f   :  { %v227_v25 = vpack.c.bf16 %v220_v22, %v220_v22  ;;  %v293_v53 = vpack.c.bf16 %v290_v51, %v289_v52 }
 0x171   :  { %v271_v33 = vunpack.c.l.bf16 %v227_v25 }
 0x173   :  { %v279_v42 = vadd.f32 %v275_v30, %v271_v33 }
 0x175   :  { %v291_v48 = vmax.f32 %v279_v42, 0.0 }
 0x176   :  { %v222_v34 = vpop.f32.mrf.mxu1 }
 0x177   :  { %v228_v37 = vpack.c.bf16 %v222_v34, %v222_v34 }
 0x179   :  { %v272_v41 = vunpack.c.l.bf16 %v228_v37 }
 0x17b   :  { %v280_v45 = vadd.f32 %v276_v40, %v272_v41 }
 0x17d   :  { %v292_v49 = vmax.f32 %v280_v45, 0.0 }
 0x17f   :  { %v294_v50 = vpack.c.bf16 %v292_v49, %v291_v48 }
 0x181   :  { %311 = vmatpush.bf16.msra.mxu2 %v294_v50 }
 0x185   :  { %312 = vmatpush.bf16.msra.mxu2 %v293_v53 }
 0x188   :  { %343 = vmatmul.msk.bf16.vlgmr.msra.gmra.mxu2 %vm199_vm1, %v295_v46 }
 0x20b   :  { %v314_v55 = vpop.f32.mrf.mxu2 }
 0x20c   :  { %v315_v56 = vadd.f32 %v314_v55, %v300_v54 }
 0x20e   :  { %318 = vst [vmem:[%s526_s7] sm:$0xff] %v315_v56 }
 0x213   :  { %v316_v57 = vpop.f32.mrf.mxu2 }

</bundles_post_ra>
